<compile_context>
chip_gen: v6e
topology: v6e:2x2x1
jax: 0.10.0
libtpu: 0.0.40
codegen_flags: <defaults>
</compile_context>

<pallas_src>
from functools import partial

import jax
import jax.numpy as jnp
from jax import lax
from jax.experimental import pallas as pl
from jax.experimental.pallas import tpu as pltpu


def _coarse_kernel(x_ref, w1_ref, b1_ref, w2_ref, b2_ref,
                   logits_ref, idx_ref, *, k, nclass):
    # ---- MLP: Linear -> ReLU -> (Dropout = identity in eval) -> Linear ----
    x = x_ref[...]                                                   # (TN, D)
    h = jnp.dot(x, w1_ref[...], preferred_element_type=jnp.float32) + b1_ref[...]
    h = jnp.maximum(h, 0.0)                                          # ReLU (f32)
    h = h.astype(w2_ref.dtype)                                       # bf16 fast path
    logits = jnp.dot(h, w2_ref[...], preferred_element_type=jnp.float32) + b2_ref[...]
    logits_ref[...] = logits.astype(logits_ref.dtype)

    # ---- top-k indices on raw logits (softmax elided: monotone in exp) ----
    tn = logits.shape[0]
    tie_bits = max(1, (nclass - 1).bit_length())
    tie_mask = (1 << tie_bits) - 1
    cls = lax.broadcasted_iota(jnp.int32, (tn, nclass), 1)           # class ids
    col = lax.broadcasted_iota(jnp.int32, (tn, k), 1)                # output cols

    # Order-preserving f32 -> signed-int32 key, with the reversed class index
    # packed into the low bits so ONE max-reduction yields value AND index
    # (first-occurrence tie behaviour, NaN rows stay in-range).
    s = pltpu.bitcast(logits, jnp.int32)
    okey = jnp.where(s < 0, s ^ jnp.int32(0x7FFFFFFF), s)
    key = (okey & jnp.int32(~tie_mask)) | (jnp.int32(nclass - 1) - cls)

    neg_min = jnp.int32(jnp.iinfo(jnp.int32).min)
    out = jnp.zeros((tn, k), jnp.int32)
    work = key
    for j in range(k):                                               # k small & static
        best = jnp.max(work, axis=-1, keepdims=True)                 # (TN, 1)
        idx_j = jnp.int32(nclass - 1) - (best & jnp.int32(tie_mask))
        out = jnp.where(col == j, idx_j, out)                        # in-register assembly
        if j + 1 < k:
            work = jnp.where(cls == idx_j, neg_min, work)
    idx_ref[...] = out                                               # single store


def _choose_tile_rows(n_rows, *, target=1024, row_align=16, min_steps=2):
    """Row tile that (a) gives >= min_steps grid steps (v7x megacore sharding),
    (b) minimizes row padding, (c) stays sublane-aligned for f32 and bf16."""
    steps = max(min_steps, pl.cdiv(n_rows, target))
    tile = max(row_align, pl.cdiv(pl.cdiv(n_rows, steps), row_align) * row_align)
    return tile, steps


def coarse_predictor(x, w1, b1, w2, b2, max_length_pred, *,
                     compute_dtype=jnp.float32, logits_dtype=jnp.float32,
                     target_tile_rows=1024):
    """x: (B, T, D). w1: (D, D), b1: (D,), w2: (D, nclass), b2: (nclass,).
    Returns (logits (B,T,nclass) in logits_dtype, topk indices (B,T,k) int32)."""
    B, T, D = x.shape
    nclass = w2.shape[1]
    k = int(max_length_pred)
    if k > nclass:
        raise ValueError(f"max_length_pred={k} > nclass={nclass} (torch.topk would error)")
    N = B * T

    tile, steps = _choose_tile_rows(N, target=target_tile_rows)
    n_pad = tile * steps

    xf = x.reshape(N, D)
    if compute_dtype != xf.dtype:
        # In a real model these casts fuse upstream / params are stored in bf16;
        # here they stand in for the "halve the dominant HBM traffic" option.
        xf = xf.astype(compute_dtype)
        w1 = w1.astype(compute_dtype)
        w2 = w2.astype(compute_dtype)
    b1 = b1.reshape(1, D).astype(jnp.float32)            # bias add / ReLU stay f32
    b2 = b2.reshape(1, nclass).astype(jnp.float32)
    if n_pad != N:
        xf = jnp.pad(xf, ((0, n_pad - N), (0, 0)))        # padded rows sliced off below

    kernel = partial(_coarse_kernel, k=k, nclass=nclass)

    def build(single_buffer_weights):
        wkw = dict(pipeline_mode=pl.Buffered(1)) if single_buffer_weights else {}
        return pl.pallas_call(
            kernel,
            out_shape=(
                jax.ShapeDtypeStruct((n_pad, nclass), logits_dtype),
                jax.ShapeDtypeStruct((n_pad, k), jnp.int32),
            ),
            grid_spec=pltpu.PrefetchScalarGridSpec(
                num_scalar_prefetch=0,
                grid=(steps,),
                in_specs=[
                    pl.BlockSpec((tile, D), lambda i: (i, 0)),              # x tile
                    pl.BlockSpec((D, D), lambda i: (0, 0), **wkw),          # W1 resident
                    pl.BlockSpec((1, D), lambda i: (0, 0), **wkw),          # b1 resident
                    pl.BlockSpec((D, nclass), lambda i: (0, 0), **wkw),     # W2 resident
                    pl.BlockSpec((1, nclass), lambda i: (0, 0), **wkw),     # b2 resident
                ],
                out_specs=[
                    pl.BlockSpec((tile, nclass), lambda i: (i, 0)),         # logits
                    pl.BlockSpec((tile, k), lambda i: (i, 0)),              # indices
                ],
            ),
            compiler_params=pltpu.CompilerParams(
                dimension_semantics=("parallel",),
                # Raises v5e's 16 MiB scoped default; well inside v7x's 64 MiB
                # physical. Padded-lane need at tile<=1024 is ~3 MiB.
                vmem_limit_bytes=32 * 1024 * 1024,
            ),
        )

    try:
        logits, idx = build(True)(xf, w1, b1, w2, b2)
    except Exception:
        # Fallback if this JAX version rejects pipeline_mode=pl.Buffered(1);
        # only the (tiny) weight double-buffering differs.
        logits, idx = build(False)(xf, w1, b1, w2, b2)

    logits = logits[:N].reshape(B, T, nclass)
    idx = idx[:N].reshape(B, T, k)
    return logits, idx


def _reference(x, w1, b1, w2, b2, k):
    hp = jax.lax.Precision.HIGHEST
    h = jnp.maximum(jnp.dot(x, w1, precision=hp) + b1, 0.0)
    logits = jnp.dot(h, w2, precision=hp) + b2
    # softmax is monotone -> identical top-k indices
    _, idx = jax.lax.top_k(logits, k)
    return logits, idx


if __name__ == "__main__":
    # Small shapes consistent with the module: batch=2, seq=8, embed_dims=32,
    # nclass=16, max_length_pred=4.
    B, T, D, NCLASS, K = 2, 8, 32, 16, 4

    key = jax.random.PRNGKey(0)
    kx, k1, k2, k3, k4 = jax.random.split(key, 5)
    x = jax.random.normal(kx, (B, T, D), dtype=jnp.float32)
    w1 = jax.random.normal(k1, (D, D), dtype=jnp.float32) * 0.05
    b1 = jax.random.normal(k2, (D,), dtype=jnp.float32) * 0.05
    w2 = jax.random.normal(k3, (D, NCLASS), dtype=jnp.float32) * 0.05
    b2 = jax.random.normal(k4, (NCLASS,), dtype=jnp.float32) * 0.05

    # ---- exact (f32) path: matches the PyTorch module's numerics ----
    logits, idx = coarse_predictor(x, w1, b1, w2, b2, K)
    jax.block_until_ready((logits, idx))

    ref_logits, ref_idx = _reference(x, w1, b1, w2, b2, K)
    assert logits.shape == (B, T, NCLASS) and idx.shape == (B, T, K)
    assert jnp.allclose(logits, ref_logits, atol=1e-4, rtol=1e-4)
    assert jnp.array_equal(idx, ref_idx.astype(jnp.int32))

    # ---- bf16 fast path (numerics-changing HBM-bytes optimization) ----
    logits_bf, idx_bf = coarse_predictor(
        x, w1, b1, w2, b2, K,
        compute_dtype=jnp.bfloat16, logits_dtype=jnp.bfloat16)
    jax.block_until_ready((logits_bf, idx_bf))
    assert logits_bf.dtype == jnp.bfloat16 and idx_bf.shape == (B, T, K)
    assert jnp.allclose(logits_bf.astype(jnp.float32), ref_logits, atol=5e-2, rtol=5e-2)

    print("KERNEL_OK")
</pallas_src>

<mosaic_0001>
module attributes {stable_mosaic.version = 11 : i64} {
  func.func @_coarse_kernel(%arg0: i32, %arg1: memref<16x32xf32, #tpu.memory_space<vmem>>, %arg2: memref<32x32xf32, #tpu.memory_space<vmem>>, %arg3: memref<1x32xf32, #tpu.memory_space<vmem>>, %arg4: memref<32x16xf32, #tpu.memory_space<vmem>>, %arg5: memref<1x16xf32, #tpu.memory_space<vmem>>, %arg6: memref<16x16xf32, #tpu.memory_space<vmem>>, %arg7: memref<16x4xi32, #tpu.memory_space<vmem>>) attributes {dimension_semantics = [#tpu.dimension_semantics<parallel>], iteration_bounds = array<i64: 2>, scalar_prefetch = 0 : i64, scratch_operands = 0 : i64, tpu.core_type = #tpu.core_type<tc>, window_params = [{transform_indices = @transform_0, window_bounds = array<i64: 16, 32>}, {pipeline_mode = #tpu.pipeline_mode<synchronous>, transform_indices = @transform_1, window_bounds = array<i64: 32, 32>}, {pipeline_mode = #tpu.pipeline_mode<synchronous>, transform_indices = @transform_2, window_bounds = array<i64: 1, 32>}, {pipeline_mode = #tpu.pipeline_mode<synchronous>, transform_indices = @transform_3, window_bounds = array<i64: 32, 16>}, {pipeline_mode = #tpu.pipeline_mode<synchronous>, transform_indices = @transform_4, window_bounds = array<i64: 1, 16>}, {transform_indices = @transform_5, window_bounds = array<i64: 16, 16>}, {transform_indices = @transform_6, window_bounds = array<i64: 16, 4>}]} {
    %c0 = arith.constant 0 : index
    %c0_0 = arith.constant 0 : index
    %0 = vector.load %arg1[%c0, %c0_0] : memref<16x32xf32, #tpu.memory_space<vmem>>, vector<16x32xf32>
    %c0_1 = arith.constant 0 : index
    %c0_2 = arith.constant 0 : index
    %1 = vector.load %arg2[%c0_1, %c0_2] : memref<32x32xf32, #tpu.memory_space<vmem>>, vector<32x32xf32>
    %cst = arith.constant dense<0.000000e+00> : vector<16x32xf32>
    %2 = tpu.matmul %0, %1, %cst {dimension_numbers = #tpu.dot_dimension_numbers<[1], [0], [0], [1], [0, 0, 1, 1], [], []>} : vector<16x32xf32>, vector<32x32xf32>, vector<16x32xf32> -> vector<16x32xf32>
    %c0_3 = arith.constant 0 : index
    %c0_4 = arith.constant 0 : index
    %3 = vector.load %arg3[%c0_3, %c0_4] : memref<1x32xf32, #tpu.memory_space<vmem>>, vector<1x32xf32>
    %4 = vector.broadcast %3 : vector<1x32xf32> to vector<16x32xf32>
    %5 = arith.addf %2, %4 : vector<16x32xf32>
    %cst_5 = arith.constant 0.000000e+00 : f32
    %6 = vector.broadcast %cst_5 : f32 to vector<16x32xf32>
    %7 = arith.maximumf %5, %6 : vector<16x32xf32>
    %c0_6 = arith.constant 0 : index
    %c0_7 = arith.constant 0 : index
    %8 = vector.load %arg4[%c0_6, %c0_7] : memref<32x16xf32, #tpu.memory_space<vmem>>, vector<32x16xf32>
    %cst_8 = arith.constant dense<0.000000e+00> : vector<16x16xf32>
    %9 = tpu.matmul %7, %8, %cst_8 {dimension_numbers = #tpu.dot_dimension_numbers<[1], [0], [0], [1], [0, 0, 1, 1], [], []>} : vector<16x32xf32>, vector<32x16xf32>, vector<16x16xf32> -> vector<16x16xf32>
    %c0_9 = arith.constant 0 : index
    %c0_10 = arith.constant 0 : index
    %10 = vector.load %arg5[%c0_9, %c0_10] : memref<1x16xf32, #tpu.memory_space<vmem>>, vector<1x16xf32>
    %11 = vector.broadcast %10 : vector<1x16xf32> to vector<16x16xf32>
    %12 = arith.addf %9, %11 : vector<16x16xf32>
    %c0_11 = arith.constant 0 : index
    %c0_12 = arith.constant 0 : index
    %13 = vector.load %arg6[%c0_11, %c0_12] : memref<16x16xf32, #tpu.memory_space<vmem>>, vector<16x16xf32>
    tpu.vector_store %arg6[%c0_11, %c0_12], %12 {strides = array<i32>} : memref<16x16xf32, #tpu.memory_space<vmem>>, vector<16x16xf32>,
    %14 = tpu.iota {dimensions = array<i32: 1>} : vector<16x16xi32>
    %15 = tpu.iota {dimensions = array<i32: 1>} : vector<16x4xi32>
    %16 = tpu.bitcast %12 : vector<16x16xf32> -> vector<16x16xi32>
    %c0_i32 = arith.constant 0 : i32
    %17 = vector.broadcast %c0_i32 : i32 to vector<16x16xi32>
    %18 = arith.cmpi slt, %16, %17 : vector<16x16xi32>
    %c2147483647_i32 = arith.constant 2147483647 : i32
    %19 = vector.broadcast %c2147483647_i32 : i32 to vector<16x16xi32>
    %20 = arith.xori %16, %19 : vector<16x16xi32>
    %21 = arith.select %18, %20, %16 : vector<16x16xi1>, vector<16x16xi32>
    %c-16_i32 = arith.constant -16 : i32
    %22 = vector.broadcast %c-16_i32 : i32 to vector<16x16xi32>
    %23 = arith.andi %21, %22 : vector<16x16xi32>
    %c15_i32 = arith.constant 15 : i32
    %24 = vector.broadcast %c15_i32 : i32 to vector<16x16xi32>
    %25 = arith.subi %24, %14 : vector<16x16xi32>
    %26 = arith.ori %23, %25 : vector<16x16xi32>
    %c0_i32_13 = arith.constant 0 : i32
    %27 = vector.broadcast %c0_i32_13 : i32 to vector<16x4xi32>
    %cst_14 = arith.constant dense<-2147483648> : vector<16xi32>
    %28 = vector.multi_reduction <maxsi>, %26, %cst_14 [1] : vector<16x16xi32> to vector<16xi32>
    %29 = vector.shape_cast %28 : vector<16xi32> to vector<16x1xi32>
    %c15_i32_15 = arith.constant 15 : i32
    %30 = vector.broadcast %c15_i32_15 : i32 to vector<16x1xi32>
    %31 = arith.andi %29, %30 : vector<16x1xi32>
    %c15_i32_16 = arith.constant 15 : i32
    %32 = vector.broadcast %c15_i32_16 : i32 to vector<16x1xi32>
    %33 = arith.subi %32, %31 : vector<16x1xi32>
    %c0_i32_17 = arith.constant 0 : i32
    %34 = vector.broadcast %c0_i32_17 : i32 to vector<16x4xi32>
    %35 = arith.cmpi eq, %15, %34 : vector<16x4xi32>
    %36 = vector.shape_cast %33 : vector<16x1xi32> to vector<16x1xi32>
    %37 = vector.broadcast %36 : vector<16x1xi32> to vector<16x4xi32>
    %38 = arith.select %35, %37, %27 : vector<16x4xi1>, vector<16x4xi32>
    %39 = vector.broadcast %33 : vector<16x1xi32> to vector<16x16xi32>
    %40 = arith.cmpi eq, %14, %39 : vector<16x16xi32>
    %c-2147483648_i32 = arith.constant -2147483648 : i32
    %41 = vector.broadcast %c-2147483648_i32 : i32 to vector<16x16xi32>
    %42 = arith.select %40, %41, %26 : vector<16x16xi1>, vector<16x16xi32>
    %cst_18 = arith.constant dense<-2147483648> : vector<16xi32>
    %43 = vector.multi_reduction <maxsi>, %42, %cst_18 [1] : vector<16x16xi32> to vector<16xi32>
    %44 = vector.shape_cast %43 : vector<16xi32> to vector<16x1xi32>
    %c15_i32_19 = arith.constant 15 : i32
    %45 = vector.broadcast %c15_i32_19 : i32 to vector<16x1xi32>
    %46 = arith.andi %44, %45 : vector<16x1xi32>
    %c15_i32_20 = arith.constant 15 : i32
    %47 = vector.broadcast %c15_i32_20 : i32 to vector<16x1xi32>
    %48 = arith.subi %47, %46 : vector<16x1xi32>
    %c1_i32 = arith.constant 1 : i32
    %49 = vector.broadcast %c1_i32 : i32 to vector<16x4xi32>
    %50 = arith.cmpi eq, %15, %49 : vector<16x4xi32>
    %51 = vector.shape_cast %48 : vector<16x1xi32> to vector<16x1xi32>
    %52 = vector.broadcast %51 : vector<16x1xi32> to vector<16x4xi32>
    %53 = arith.select %50, %52, %38 : vector<16x4xi1>, vector<16x4xi32>
    %54 = vector.broadcast %48 : vector<16x1xi32> to vector<16x16xi32>
    %55 = arith.cmpi eq, %14, %54 : vector<16x16xi32>
    %c-2147483648_i32_21 = arith.constant -2147483648 : i32
    %56 = vector.broadcast %c-2147483648_i32_21 : i32 to vector<16x16xi32>
    %57 = arith.select %55, %56, %42 : vector<16x16xi1>, vector<16x16xi32>
    %cst_22 = arith.constant dense<-2147483648> : vector<16xi32>
    %58 = vector.multi_reduction <maxsi>, %57, %cst_22 [1] : vector<16x16xi32> to vector<16xi32>
    %59 = vector.shape_cast %58 : vector<16xi32> to vector<16x1xi32>
    %c15_i32_23 = arith.constant 15 : i32
    %60 = vector.broadcast %c15_i32_23 : i32 to vector<16x1xi32>
    %61 = arith.andi %59, %60 : vector<16x1xi32>
    %c15_i32_24 = arith.constant 15 : i32
    %62 = vector.broadcast %c15_i32_24 : i32 to vector<16x1xi32>
    %63 = arith.subi %62, %61 : vector<16x1xi32>
    %c2_i32 = arith.constant 2 : i32
    %64 = vector.broadcast %c2_i32 : i32 to vector<16x4xi32>
    %65 = arith.cmpi eq, %15, %64 : vector<16x4xi32>
    %66 = vector.shape_cast %63 : vector<16x1xi32> to vector<16x1xi32>
    %67 = vector.broadcast %66 : vector<16x1xi32> to vector<16x4xi32>
    %68 = arith.select %65, %67, %53 : vector<16x4xi1>, vector<16x4xi32>
    %69 = vector.broadcast %63 : vector<16x1xi32> to vector<16x16xi32>
    %70 = arith.cmpi eq, %14, %69 : vector<16x16xi32>
    %c-2147483648_i32_25 = arith.constant -2147483648 : i32
    %71 = vector.broadcast %c-2147483648_i32_25 : i32 to vector<16x16xi32>
    %72 = arith.select %70, %71, %57 : vector<16x16xi1>, vector<16x16xi32>
    %cst_26 = arith.constant dense<-2147483648> : vector<16xi32>
    %73 = vector.multi_reduction <maxsi>, %72, %cst_26 [1] : vector<16x16xi32> to vector<16xi32>
    %74 = vector.shape_cast %73 : vector<16xi32> to vector<16x1xi32>
    %c15_i32_27 = arith.constant 15 : i32
    %75 = vector.broadcast %c15_i32_27 : i32 to vector<16x1xi32>
    %76 = arith.andi %74, %75 : vector<16x1xi32>
    %c15_i32_28 = arith.constant 15 : i32
    %77 = vector.broadcast %c15_i32_28 : i32 to vector<16x1xi32>
    %78 = arith.subi %77, %76 : vector<16x1xi32>
    %c3_i32 = arith.constant 3 : i32
    %79 = vector.broadcast %c3_i32 : i32 to vector<16x4xi32>
    %80 = arith.cmpi eq, %15, %79 : vector<16x4xi32>
    %81 = vector.shape_cast %78 : vector<16x1xi32> to vector<16x1xi32>
    %82 = vector.broadcast %81 : vector<16x1xi32> to vector<16x4xi32>
    %83 = arith.select %80, %82, %68 : vector<16x4xi1>, vector<16x4xi32>
    %c0_29 = arith.constant 0 : index
    %c0_30 = arith.constant 0 : index
    %84 = vector.load %arg7[%c0_29, %c0_30] : memref<16x4xi32, #tpu.memory_space<vmem>>, vector<16x4xi32>
    tpu.vector_store %arg7[%c0_29, %c0_30], %83 {strides = array<i32>} : memref<16x4xi32, #tpu.memory_space<vmem>>, vector<16x4xi32>,
    return
  }
  func.func @transform_0(%arg0: i32) -> (i32, i32) {
    %c0_i32 = arith.constant 0 : i32
    %c0_i32_0 = arith.constant 0 : i32
    return %arg0, %c0_i32 : i32, i32
  }
  func.func @transform_1(%arg0: i32) -> (i32, i32) {
    %c0_i32 = arith.constant 0 : i32
    %c0_i32_0 = arith.constant 0 : i32
    %c0_i32_1 = arith.constant 0 : i32
    return %c0_i32, %c0_i32_0 : i32, i32
  }
  func.func @transform_2(%arg0: i32) -> (i32, i32) {
    %c0_i32 = arith.constant 0 : i32
    %c0_i32_0 = arith.constant 0 : i32
    %c0_i32_1 = arith.constant 0 : i32
    return %c0_i32, %c0_i32_0 : i32, i32
  }
  func.func @transform_3(%arg0: i32) -> (i32, i32) {
    %c0_i32 = arith.constant 0 : i32
    %c0_i32_0 = arith.constant 0 : i32
    %c0_i32_1 = arith.constant 0 : i32
    return %c0_i32, %c0_i32_0 : i32, i32
  }
  func.func @transform_4(%arg0: i32) -> (i32, i32) {
    %c0_i32 = arith.constant 0 : i32
    %c0_i32_0 = arith.constant 0 : i32
    %c0_i32_1 = arith.constant 0 : i32
    return %c0_i32, %c0_i32_0 : i32, i32
  }
  func.func @transform_5(%arg0: i32) -> (i32, i32) {
    %c0_i32 = arith.constant 0 : i32
    %c0_i32_0 = arith.constant 0 : i32
    return %arg0, %c0_i32 : i32, i32
  }
  func.func @transform_6(%arg0: i32) -> (i32, i32) {
    %c0_i32 = arith.constant 0 : i32
    %c0_i32_0 = arith.constant 0 : i32
    return %arg0, %c0_i32 : i32, i32
  }
}

module attributes {stable_mosaic.version = 11 : i64} {
  func.func @_coarse_kernel(%arg0: i32, %arg1: memref<16x32xf32, #tpu.memory_space<vmem>>, %arg2: memref<32x32xf32, #tpu.memory_space<vmem>>, %arg3: memref<1x32xf32, #tpu.memory_space<vmem>>, %arg4: memref<32x16xf32, #tpu.memory_space<vmem>>, %arg5: memref<1x16xf32, #tpu.memory_space<vmem>>, %arg6: memref<16x16xf32, #tpu.memory_space<vmem>>, %arg7: memref<16x4xi32, #tpu.memory_space<vmem>>) attributes {dimension_semantics = [#tpu.dimension_semantics<parallel>], iteration_bounds = array<i64: 2>, scalar_prefetch = 0 : i64, scratch_operands = 0 : i64, tpu.core_type = #tpu.core_type<tc>, window_params = [{transform_indices = @transform_0, window_bounds = array<i64: 16, 32>}, {pipeline_mode = #tpu.pipeline_mode<synchronous>, transform_indices = @transform_1, window_bounds = array<i64: 32, 32>}, {pipeline_mode = #tpu.pipeline_mode<synchronous>, transform_indices = @transform_2, window_bounds = array<i64: 1, 32>}, {pipeline_mode = #tpu.pipeline_mode<synchronous>, transform_indices = @transform_3, window_bounds = array<i64: 32, 16>}, {pipeline_mode = #tpu.pipeline_mode<synchronous>, transform_indices = @transform_4, window_bounds = array<i64: 1, 16>}, {transform_indices = @transform_5, window_bounds = array<i64: 16, 16>}, {transform_indices = @transform_6, window_bounds = array<i64: 16, 4>}]} {
    %c0 = arith.constant 0 : index
    %c0_0 = arith.constant 0 : index
    %0 = vector.load %arg1[%c0, %c0_0] : memref<16x32xf32, #tpu.memory_space<vmem>>, vector<16x32xf32>
    %c0_1 = arith.constant 0 : index
    %c0_2 = arith.constant 0 : index
    %1 = vector.load %arg2[%c0_1, %c0_2] : memref<32x32xf32, #tpu.memory_space<vmem>>, vector<32x32xf32>
    %cst = arith.constant dense<0.000000e+00> : vector<16x32xf32>
    %2 = tpu.matmul %0, %1, %cst {dimension_numbers = #tpu.dot_dimension_numbers<[1], [0], [0], [1], [0, 0, 1, 1], [], []>} : vector<16x32xf32>, vector<32x32xf32>, vector<16x32xf32> -> vector<16x32xf32>
    %c0_3 = arith.constant 0 : index
    %c0_4 = arith.constant 0 : index
    %3 = vector.load %arg3[%c0_3, %c0_4] : memref<1x32xf32, #tpu.memory_space<vmem>>, vector<1x32xf32>
    %4 = vector.broadcast %3 : vector<1x32xf32> to vector<16x32xf32>
    %5 = arith.addf %2, %4 : vector<16x32xf32>
    %cst_5 = arith.constant 0.000000e+00 : f32
    %6 = vector.broadcast %cst_5 : f32 to vector<16x32xf32>
    %7 = arith.maximumf %5, %6 : vector<16x32xf32>
    %c0_6 = arith.constant 0 : index
    %c0_7 = arith.constant 0 : index
    %8 = vector.load %arg4[%c0_6, %c0_7] : memref<32x16xf32, #tpu.memory_space<vmem>>, vector<32x16xf32>
    %cst_8 = arith.constant dense<0.000000e+00> : vector<16x16xf32>
    %9 = tpu.matmul %7, %8, %cst_8 {dimension_numbers = #tpu.dot_dimension_numbers<[1], [0], [0], [1], [0, 0, 1, 1], [], []>} : vector<16x32xf32>, vector<32x16xf32>, vector<16x16xf32> -> vector<16x16xf32>
    %c0_9 = arith.constant 0 : index
    %c0_10 = arith.constant 0 : index
    %10 = vector.load %arg5[%c0_9, %c0_10] : memref<1x16xf32, #tpu.memory_space<vmem>>, vector<1x16xf32>
    %11 = vector.broadcast %10 : vector<1x16xf32> to vector<16x16xf32>
    %12 = arith.addf %9, %11 : vector<16x16xf32>
    %c0_11 = arith.constant 0 : index
    %c0_12 = arith.constant 0 : index
    %13 = vector.load %arg6[%c0_11, %c0_12] : memref<16x16xf32, #tpu.memory_space<vmem>>, vector<16x16xf32>
    tpu.vector_store %arg6[%c0_11, %c0_12], %12 {strides = array<i32>} : memref<16x16xf32, #tpu.memory_space<vmem>>, vector<16x16xf32>,
    %14 = tpu.iota {dimensions = array<i32: 1>} : vector<16x16xi32>
    %15 = tpu.iota {dimensions = array<i32: 1>} : vector<16x4xi32>
    %16 = tpu.bitcast %12 : vector<16x16xf32> -> vector<16x16xi32>
    %c0_i32 = arith.constant 0 : i32
    %17 = vector.broadcast %c0_i32 : i32 to vector<16x16xi32>
    %18 = arith.cmpi slt, %16, %17 : vector<16x16xi32>
    %c2147483647_i32 = arith.constant 2147483647 : i32
    %19 = vector.broadcast %c2147483647_i32 : i32 to vector<16x16xi32>
    %20 = arith.xori %16, %19 : vector<16x16xi32>
    %21 = arith.select %18, %20, %16 : vector<16x16xi1>, vector<16x16xi32>
    %c-16_i32 = arith.constant -16 : i32
    %22 = vector.broadcast %c-16_i32 : i32 to vector<16x16xi32>
    %23 = arith.andi %21, %22 : vector<16x16xi32>
    %c15_i32 = arith.constant 15 : i32
    %24 = vector.broadcast %c15_i32 : i32 to vector<16x16xi32>
    %25 = arith.subi %24, %14 : vector<16x16xi32>
    %26 = arith.ori %23, %25 : vector<16x16xi32>
    %c0_i32_13 = arith.constant 0 : i32
    %27 = vector.broadcast %c0_i32_13 : i32 to vector<16x4xi32>
    %cst_14 = arith.constant dense<-2147483648> : vector<16xi32>
    %28 = vector.multi_reduction <maxsi>, %26, %cst_14 [1] : vector<16x16xi32> to vector<16xi32>
    %29 = vector.shape_cast %28 : vector<16xi32> to vector<16x1xi32>
    %c15_i32_15 = arith.constant 15 : i32
    %30 = vector.broadcast %c15_i32_15 : i32 to vector<16x1xi32>
    %31 = arith.andi %29, %30 : vector<16x1xi32>
    %c15_i32_16 = arith.constant 15 : i32
    %32 = vector.broadcast %c15_i32_16 : i32 to vector<16x1xi32>
    %33 = arith.subi %32, %31 : vector<16x1xi32>
    %c0_i32_17 = arith.constant 0 : i32
    %34 = vector.broadcast %c0_i32_17 : i32 to vector<16x4xi32>
    %35 = arith.cmpi eq, %15, %34 : vector<16x4xi32>
    %36 = vector.shape_cast %33 : vector<16x1xi32> to vector<16x1xi32>
    %37 = vector.broadcast %36 : vector<16x1xi32> to vector<16x4xi32>
    %38 = arith.select %35, %37, %27 : vector<16x4xi1>, vector<16x4xi32>
    %39 = vector.broadcast %33 : vector<16x1xi32> to vector<16x16xi32>
    %40 = arith.cmpi eq, %14, %39 : vector<16x16xi32>
    %c-2147483648_i32 = arith.constant -2147483648 : i32
    %41 = vector.broadcast %c-2147483648_i32 : i32 to vector<16x16xi32>
    %42 = arith.select %40, %41, %26 : vector<16x16xi1>, vector<16x16xi32>
    %cst_18 = arith.constant dense<-2147483648> : vector<16xi32>
    %43 = vector.multi_reduction <maxsi>, %42, %cst_18 [1] : vector<16x16xi32> to vector<16xi32>
    %44 = vector.shape_cast %43 : vector<16xi32> to vector<16x1xi32>
    %c15_i32_19 = arith.constant 15 : i32
    %45 = vector.broadcast %c15_i32_19 : i32 to vector<16x1xi32>
    %46 = arith.andi %44, %45 : vector<16x1xi32>
    %c15_i32_20 = arith.constant 15 : i32
    %47 = vector.broadcast %c15_i32_20 : i32 to vector<16x1xi32>
    %48 = arith.subi %47, %46 : vector<16x1xi32>
    %c1_i32 = arith.constant 1 : i32
    %49 = vector.broadcast %c1_i32 : i32 to vector<16x4xi32>
    %50 = arith.cmpi eq, %15, %49 : vector<16x4xi32>
    %51 = vector.shape_cast %48 : vector<16x1xi32> to vector<16x1xi32>
    %52 = vector.broadcast %51 : vector<16x1xi32> to vector<16x4xi32>
    %53 = arith.select %50, %52, %38 : vector<16x4xi1>, vector<16x4xi32>
    %54 = vector.broadcast %48 : vector<16x1xi32> to vector<16x16xi32>
    %55 = arith.cmpi eq, %14, %54 : vector<16x16xi32>
    %c-2147483648_i32_21 = arith.constant -2147483648 : i32
    %56 = vector.broadcast %c-2147483648_i32_21 : i32 to vector<16x16xi32>
    %57 = arith.select %55, %56, %42 : vector<16x16xi1>, vector<16x16xi32>
    %cst_22 = arith.constant dense<-2147483648> : vector<16xi32>
    %58 = vector.multi_reduction <maxsi>, %57, %cst_22 [1] : vector<16x16xi32> to vector<16xi32>
    %59 = vector.shape_cast %58 : vector<16xi32> to vector<16x1xi32>
    %c15_i32_23 = arith.constant 15 : i32
    %60 = vector.broadcast %c15_i32_23 : i32 to vector<16x1xi32>
    %61 = arith.andi %59, %60 : vector<16x1xi32>
    %c15_i32_24 = arith.constant 15 : i32
    %62 = vector.broadcast %c15_i32_24 : i32 to vector<16x1xi32>
    %63 = arith.subi %62, %61 : vector<16x1xi32>
    %c2_i32 = arith.constant 2 : i32
    %64 = vector.broadcast %c2_i32 : i32 to vector<16x4xi32>
    %65 = arith.cmpi eq, %15, %64 : vector<16x4xi32>
    %66 = vector.shape_cast %63 : vector<16x1xi32> to vector<16x1xi32>
    %67 = vector.broadcast %66 : vector<16x1xi32> to vector<16x4xi32>
    %68 = arith.select %65, %67, %53 : vector<16x4xi1>, vector<16x4xi32>
    %69 = vector.broadcast %63 : vector<16x1xi32> to vector<16x16xi32>
    %70 = arith.cmpi eq, %14, %69 : vector<16x16xi32>
    %c-2147483648_i32_25 = arith.constant -2147483648 : i32
    %71 = vector.broadcast %c-2147483648_i32_25 : i32 to vector<16x16xi32>
    %72 = arith.select %70, %71, %57 : vector<16x16xi1>, vector<16x16xi32>
    %cst_26 = arith.constant dense<-2147483648> : vector<16xi32>
    %73 = vector.multi_reduction <maxsi>, %72, %cst_26 [1] : vector<16x16xi32> to vector<16xi32>
    %74 = vector.shape_cast %73 : vector<16xi32> to vector<16x1xi32>
    %c15_i32_27 = arith.constant 15 : i32
    %75 = vector.broadcast %c15_i32_27 : i32 to vector<16x1xi32>
    %76 = arith.andi %74, %75 : vector<16x1xi32>
    %c15_i32_28 = arith.constant 15 : i32
    %77 = vector.broadcast %c15_i32_28 : i32 to vector<16x1xi32>
    %78 = arith.subi %77, %76 : vector<16x1xi32>
    %c3_i32 = arith.constant 3 : i32
    %79 = vector.broadcast %c3_i32 : i32 to vector<16x4xi32>
    %80 = arith.cmpi eq, %15, %79 : vector<16x4xi32>
    %81 = vector.shape_cast %78 : vector<16x1xi32> to vector<16x1xi32>
    %82 = vector.broadcast %81 : vector<16x1xi32> to vector<16x4xi32>
    %83 = arith.select %80, %82, %68 : vector<16x4xi1>, vector<16x4xi32>
    %c0_29 = arith.constant 0 : index
    %c0_30 = arith.constant 0 : index
    %84 = vector.load %arg7[%c0_29, %c0_30] : memref<16x4xi32, #tpu.memory_space<vmem>>, vector<16x4xi32>
    tpu.vector_store %arg7[%c0_29, %c0_30], %83 {strides = array<i32>} : memref<16x4xi32, #tpu.memory_space<vmem>>, vector<16x4xi32>,
    return
  }
  func.func @transform_0(%arg0: i32) -> (i32, i32) {
    %c0_i32 = arith.constant 0 : i32
    %c0_i32_0 = arith.constant 0 : i32
    return %arg0, %c0_i32 : i32, i32
  }
  func.func @transform_1(%arg0: i32) -> (i32, i32) {
    %c0_i32 = arith.constant 0 : i32
    %c0_i32_0 = arith.constant 0 : i32
    %c0_i32_1 = arith.constant 0 : i32
    return %c0_i32, %c0_i32_0 : i32, i32
  }
  func.func @transform_2(%arg0: i32) -> (i32, i32) {
    %c0_i32 = arith.constant 0 : i32
    %c0_i32_0 = arith.constant 0 : i32
    %c0_i32_1 = arith.constant 0 : i32
    return %c0_i32, %c0_i32_0 : i32, i32
  }
  func.func @transform_3(%arg0: i32) -> (i32, i32) {
    %c0_i32 = arith.constant 0 : i32
    %c0_i32_0 = arith.constant 0 : i32
    %c0_i32_1 = arith.constant 0 : i32
    return %c0_i32, %c0_i32_0 : i32, i32
  }
  func.func @transform_4(%arg0: i32) -> (i32, i32) {
    %c0_i32 = arith.constant 0 : i32
    %c0_i32_0 = arith.constant 0 : i32
    %c0_i32_1 = arith.constant 0 : i32
    return %c0_i32, %c0_i32_0 : i32, i32
  }
  func.func @transform_5(%arg0: i32) -> (i32, i32) {
    %c0_i32 = arith.constant 0 : i32
    %c0_i32_0 = arith.constant 0 : i32
    return %arg0, %c0_i32 : i32, i32
  }
  func.func @transform_6(%arg0: i32) -> (i32, i32) {
    %c0_i32 = arith.constant 0 : i32
    %c0_i32_0 = arith.constant 0 : i32
    return %arg0, %c0_i32 : i32, i32
  }
}

</mosaic_0001>

<bundles_post_ra>
// kernel: tpu_custom_call.1
= control target key start
LH: loop header
LB: loop body
LE: loop exit
PB: predicated region body
PF: predicated region fallthrough
CT: control target
= control target key end

     0   :  { %12 = vsyncpa [#allocation3], 0  ;;  %s908_s21 = smov 0   ;;  %s999_s0 = inlined_call_operand.vmem [shape: f32[32,32], index: 0, kind: input, shape index: {}]   ;;  %s1000_s1 = inlined_call_operand.hbm [shape: f32[32,32], index: 1, kind: input, shape index: {}]   ;;  %s1001_s2 = inlined_call_operand.vmem [shape: f32[1,32], index: 2, kind: input, shape index: {}]   ;;  %s1002_s3 = inlined_call_operand.vmem [shape: f32[32,16], index: 3, kind: input, shape index: {}]   ;;  %s1003_s4 = inlined_call_operand.vmem [shape: f32[1,16], index: 4, kind: input, shape index: {}]   ;;  %s1004_s5 = inlined_call_operand.vmem [shape: f32[32,16], index: 5, kind: output, shape index: {0}]   ;;  %s1005_s6 = inlined_call_operand.vmem [shape: s32[32,4], index: 6, kind: output, shape index: {1}]  }
   0x1 LB: > { %s756_s22 = sadd.s32 4294967295, %s868_s21   ;;  %p758_p0 = scmp.ge.s32.totalorder %s868_s21, 1  ;;  %s868_s21 = sphi %s908_s21, %s18_s21  }
   0x2   : > { %p185_p1 = scmp.lt.s32.totalorder %s868_s21, 3  ;;  %s870_s23 = smov [#allocation2]  }
   0x3   : > { %s197_s24 = sshll.u32 %s870_s23, 4  ;;  %p920_p3 = scmp.eq.s32.totalorder %s756_s22, 0  ;;  %s198_s24 = int_to_ptr.vmem [resolvable:$true] %s197_s24 }
   0x4   : > { %p916_p2 = pnand %p758_p0, %p185_p1  ;;  %s843_s27 = scalar_lea.vmem %s198_s24, 512 }
   0x5   : > { %p844_p7 = scmp.ne.s32.totalorder %s198_s24, %s843_s27  ;;  %p851_p10 = scmp.lt.s32.totalorder %s198_s24, %s198_s24 }
   0x6   : > { %p815_p4 = pneg %p916_p2  ;;  %p852_p11 = scmp.lt.s32.totalorder %s843_s27, %s843_s27 }
   0x8   : > { %p816_p5 = pnand %p920_p3, %p815_p4  ;;  %p853_p12 = por %p852_p11, %p851_p10 }
   0xa   : > { %p834_p6 = pneg %p816_p5 }
   0xc   : > { %p846_p8 = pnand %p844_p7, %p834_p6 }
   0xe   : > { %p847_p9 = pneg %p846_p8 }
  0x10   : > { %p854_p13 = pnand %p853_p12, %p847_p9 }
  0x12   : > { %857 = shalt.err (!%p854_p13)
}
  0x13   : > { %s871_s28 = smov 128   ;;  %s872_s29 = smov 8  }
  0x14   : > { %818 = dma.hbm_to_vmem [thread:$0]  (!%p816_p5), %s1000_s1, 512, %s198_s24, [#allocation3], %s871_s28, %s871_s28, %s872_s29  }
  0x15   : > { %231 = sbr.rel (%p916_p2) target bundleno = 1616 (0x650), region = 40 }
  0x1a   : > { %863 = dma.done.wait (%p920_p3), [#allocation3], 512  }
  0x1b   : > { %865 = vsyncadd (%p920_p3), [#allocation3], 4294966784  ;;  %s763_s8 = sshll.u32 %s756_s22, 1  ;;  %vm297_vm0 = vcmask 261120   ;;  %v289_v0 = vld [vmem:[#allocation2 + $0x18] sm:$0xff]  ;;  %v288_v1 = vld [vmem:[#allocation2 + $0x10] sm:$0xff]  ;;  %v476_v17 = vlaneseq }
  0x1c   : > { %p267_p0 = scmp.lt.s32.totalorder %s763_s8, 3  ;;  %789 = vmatprep.subr.mxu0 %v289_v0  ;;  %v287_v3 = vld [vmem:[#allocation2 + $0x8] sm:$0xff]  ;;  %v286_v4 = vld [vmem:[#allocation2] sm:$0xff]  ;;  %v384_v6 = vld [vmem:[%s1002_s3 + $0x18] sm:$0xff]  ;;  %vm473_vm1 = vcmask 130048  }
  0x1d   : > { %790 = vmatpush3.msra.mxu0 %v289_v0  ;;  %800 = vmatprep.subr.mxu1 %v384_v6  ;;  %v383_v7 = vld [vmem:[%s1002_s3 + $0x10] sm:$0xff]  ;;  %v382_v8 = vld [vmem:[%s1002_s3 + $0x8] sm:$0xff]  ;;  %v381_v9 = vld [vmem:[%s1002_s3] sm:$0xff]  ;;  %v965_v20 = vand.u32 127, %v476_v17 }
  0x1e   : > { %s1009_s8 = smov (!%p267_p0, %s763_s8), 3  ;;  %791 = vmatprep.subr.mxu0 %v288_v1  ;;  %801 = vmatpush3.msra.mxu1 %v384_v6  ;;  %v769_v10 = vld [vmem:[%s1001_s2] ss:$0 sm:$0xff] }
  0x1f   : > { %s937_s9 = sshll.u32 %s1009_s8, 3  ;;  %792 = vmatpush3.msra.mxu0 %v288_v1  ;;  %802 = vmatprep.subr.mxu1 %v383_v7  ;;  %v772_v18 = vld [vmem:[%s1003_s4] ss:$0 sm:$0xff]  ;;  %v488_v25 = vsub.s32 15, %v965_v20  ;;  %vm525_vm10 = vcmp.eq.s32.totalorder %v965_v20, 0  ;;  %vm566_vm11 = vcmp.eq.s32.totalorder %v965_v20, 1 }
  0x20   : > { %s270_s12 = scalar_lea.vmem %s999_s0, %s937_s9  ;;  %793 = vmatprep.subr.mxu0 %v287_v3  ;;  %803 = vmatpush3.msra.mxu1 %v383_v7  ;;  %s276_s28 = scalar_lea.vmem %s1004_s5, %s937_s9 }
  0x21   : > { %v284_v2 = vld [vmem:[%s270_s12] sm:$0xff]  ;;  %794 = vmatpush3.msra.mxu0 %v287_v3  ;;  %v285_v5 = vld [vmem:[%s270_s12 + $0x8] sm:$0xff]  ;;  %804 = vmatprep.subr.mxu1 %v382_v8  ;;  %s282_s7 = scalar_lea.vmem %s1005_s6, %s937_s9 }
  0x22   : > { %797 = vmatprep.mubr.msk.f32.mxu0 %vm297_vm0, %v284_v2  ;;  %795 = vmatprep.subr.mxu0 %v286_v4 }
  0x23   : > { %796 = vmatpush3.msra.mxu0 %v286_v4  ;;  %805 = vmatpush3.msra.mxu1 %v382_v8 }
  0x24   : > { %798 = vmatmul.mubr.msk.f32.vlgmr.msra.gmra.mxu0 %vm297_vm0, %v285_v5  ;;  %806 = vmatprep.subr.mxu1 %v381_v9 }
  0x25   : > { %807 = vmatpush3.msra.mxu1 %v381_v9 }
  0xe4   : > { %v799_v11 = vpop.f32.mrf.mxu0 }
  0xe5   : > { %v376_v12 = vadd.f32 %v799_v11, %v769_v10 }
  0xe6   : > { %v370_v13 = vpop.f32.mrf.mxu0 }
  0xe7   : > { %v371_v14 = vadd.f32 %v769_v10, %v370_v13  ;;  %v380_v16 = vmax.f32 %v376_v12, 0.0 }
  0xe9   : > { %v379_v15 = vmax.f32 %v371_v14, 0.0 }
  0xeb   : > { %808 = vmatprep.mubr.msk.f32.mxu1 %vm297_vm0, %v379_v15 }
  0xec   : > { %809 = vmatmul.mubr.msk.f32.vlgmr.msra.gmra.mxu1 %vm297_vm0, %v380_v16  ;;  %vm607_vm0 = vcmp.eq.s32.totalorder %v965_v20, 2 }
 0x1ac   : > { %v810_v19 = vpop.f32.mrf.mxu1 }
 0x1ad   : > { %v470_v21 = vadd.f32 %v810_v19, %v772_v18 }
 0x1ae   : > { %v464_v22 = vpop.f32.mrf.mxu1 }
 0x1af   : > { %vm481_vm2 = vcmp.lt.s32.totalorder %v470_v21, 0  ;;  %v483_v23 = vxor.u32 2147483647, %v470_v21  ;;  %v465_v24 = vadd.f32 %v772_v18, %v464_v22  ;;  %475 = vst.msk [vmem:[%s276_s28 + $0x8] sm:$0xff] %vm473_vm1, %v470_v21 }
 0x1b1   : > { %474 = vst.msk [vmem:[%s276_s28] sm:$0xff] %vm473_vm1, %v465_v24  ;;  %vm480_vm3 = vcmp.lt.s32.totalorder %v465_v24, 0  ;;  %v482_v26 = vxor.u32 2147483647, %v465_v24  ;;  %v485_v27 = vsel %vm481_vm2, %v483_v23, %v470_v21 }
 0x1b2   : > { %v487_v28 = vand.u32 4294967280, %v485_v27 }
 0x1b3   : > { %v484_v29 = vsel %vm480_vm3, %v482_v26, %v465_v24 }
 0x1b4   : > { %v486_v30 = vand.u32 4294967280, %v484_v29  ;;  %v490_v31 = vor.u32 %v488_v25, %v487_v28 }
 0x1b6   : > { %v489_v32 = vor.u32 %v488_v25, %v486_v30  ;;  %v506_v34 = vsel %vm473_vm1, %v490_v31, 2147483648 }
 0x1b7   : > { %v508_v37 = vshra.s32 %v506_v34, 16  ;;  %v507_v42 = vand.u32 65535, %v506_v34 }
 0x1b8   : > { %v491_v33 = vsel %vm473_vm1, %v489_v32, 2147483648 }
 0x1b9   : > { %v493_v35 = vshra.s32 %v491_v33, 16  ;;  %v510_v38 = vcvt.s32.f32 %v508_v37  ;;  %v492_v39 = vand.u32 65535, %v491_v33  ;;  %v509_v45 = vcvt.s32.f32 %v507_v42 }
 0x1bb   : > { %v495_v36 = vcvt.s32.f32 %v493_v35  ;;  %v494_v41 = vcvt.s32.f32 %v492_v39 }
 0x1bd   : > { %496 = vmax.xlane.f32.xlu0 %v495_v36 }
 0x1c1   : > { %511 = vmax.xlane.f32.xlu0 %v510_v38 }
 0x246   : > { %v497_v40 = vpop.xlane.xlu0 %496 }
 0x247   : > { %vm498_vm4 = vcmp.eq.f32.partialorder %v495_v36, %v497_v40  ;;  %v503_v47 = vcvt.f32.s32 %v497_v40 }
 0x248   : > { %v499_v43 = vsel %vm498_vm4, %v494_v41, -inf }
 0x249   : > { %500 = vmax.xlane.f32.xlu1 %v499_v43  ;;  %v504_v49 = vshll.u32 %v503_v47, 16 }
 0x24a   : > { %v512_v44 = vpop.xlane.xlu0 %511 }
 0x24b   : > { %vm513_vm5 = vcmp.eq.f32.partialorder %v510_v38, %v512_v44  ;;  %v518_v50 = vcvt.f32.s32 %v512_v44 }
 0x24c   : > { %v514_v46 = vsel %vm513_vm5, %v509_v45, -inf }
 0x24d   : > { %515 = vmax.xlane.f32.xlu1 %v514_v46  ;;  %v519_v54 = vshll.u32 %v518_v50, 16 }
 0x2d2   : > { %v501_v48 = vpop.xlane.xlu1 %500 }
 0x2d3   : > { %v502_v51 = vcvt.f32.s32 %v501_v48 }
 0x2d5   : > { %v505_v52 = vadd.s32 %v504_v49, %v502_v51 }
 0x2d6   : > { %v516_v53 = vpop.xlane.xlu1 %515 }
 0x2d7   : > { %v521_v55 = vand.u32 15, %v505_v52  ;;  %v517_v56 = vcvt.f32.s32 %v516_v53 }
 0x2d9   : > { %v523_v57 = vsub.s32 15, %v521_v55  ;;  %v520_v58 = vadd.s32 %v519_v54, %v517_v56 }
 0x2db   : > { %v522_v59 = vand.u32 15, %v520_v58  ;;  %vm528_vm6 = vcmp.eq.s32.totalorder %v965_v20, %v523_v57  ;;  %v526_v26 = vsel %vm525_vm10, %v523_v57, 0 }
 0x2dc   : > { %v530_v60 = vsel %vm528_vm6, 2147483648, %v489_v32  ;;  %vm651_vm6 = vcmask 31744  }
 0x2dd   : > { %v524_v61 = vsub.s32 15, %v522_v59  ;;  %v532_v62 = vsel %vm473_vm1, %v530_v60, 2147483648 }
 0x2de   : > { %v534_v63 = vshra.s32 %v532_v62, 16  ;;  %v533_v5 = vand.u32 65535, %v532_v62 }
 0x2df   : > { %vm529_vm7 = vcmp.eq.s32.totalorder %v965_v20, %v524_v61  ;;  %v527_v32 = vsel %vm525_vm10, %v524_v61, 0 }
 0x2e0   : > { %v536_v0 = vcvt.s32.f32 %v534_v63  ;;  %v531_v1 = vsel %vm529_vm7, 2147483648, %v490_v31  ;;  %v535_v7 = vcvt.s32.f32 %v533_v5 }
 0x2e1   : > { %v547_v2 = vsel %vm473_vm1, %v531_v1, 2147483648 }
 0x2e2   : > { %537 = vmax.xlane.f32.xlu0 %v536_v0  ;;  %v549_v3 = vshra.s32 %v547_v2, 16  ;;  %v548_v8 = vand.u32 65535, %v547_v2 }
 0x2e4   : > { %v551_v4 = vcvt.s32.f32 %v549_v3  ;;  %v550_v11 = vcvt.s32.f32 %v548_v8 }
 0x2e6   : > { %552 = vmax.xlane.f32.xlu1 %v551_v4 }
 0x36b   : > { %v538_v6 = vpop.xlane.xlu0 %537 }
 0x36c   : > { %vm539_vm8 = vcmp.eq.f32.partialorder %v536_v0, %v538_v6  ;;  %v544_v13 = vcvt.f32.s32 %v538_v6 }
 0x36d   : > { %v540_v9 = vsel %vm539_vm8, %v535_v7, -inf }
 0x36e   : > { %541 = vmax.xlane.f32.xlu0 %v540_v9  ;;  %v545_v15 = vshll.u32 %v544_v13, 16 }
 0x36f   : > { %v553_v10 = vpop.xlane.xlu1 %552 }
 0x370   : > { %vm554_vm9 = vcmp.eq.f32.partialorder %v551_v4, %v553_v10  ;;  %v559_v16 = vcvt.f32.s32 %v553_v10 }
 0x371   : > { %v555_v12 = vsel %vm554_vm9, %v550_v11, -inf }
 0x372   : > { %556 = vmax.xlane.f32.xlu1 %v555_v12  ;;  %v560_v21 = vshll.u32 %v559_v16, 16 }
 0x3f7   : > { %v542_v14 = vpop.xlane.xlu0 %541 }
 0x3f8   : > { %v543_v17 = vcvt.f32.s32 %v542_v14 }
 0x3fa   : > { %v546_v18 = vadd.s32 %v545_v15, %v543_v17 }
 0x3fb   : > { %v557_v19 = vpop.xlane.xlu1 %556 }
 0x3fc   : > { %v562_v22 = vand.u32 15, %v546_v18  ;;  %v558_v23 = vcvt.f32.s32 %v557_v19 }
 0x3fe   : > { %v564_v24 = vsub.s32 15, %v562_v22  ;;  %v561_v25 = vadd.s32 %v560_v21, %v558_v23 }
 0x400   : > { %v567_v27 = vsel %vm566_vm11, %v564_v24, %v526_v26  ;;  %v563_v28 = vand.u32 15, %v561_v25  ;;  %vm569_vm12 = vcmp.eq.s32.totalorder %v965_v20, %v564_v24 }
 0x401   : > { %v571_v29 = vsel %vm569_vm12, 2147483648, %v530_v60 }
 0x402   : > { %v565_v30 = vsub.s32 15, %v563_v28  ;;  %v573_v31 = vsel %vm473_vm1, %v571_v29, 2147483648 }
 0x403   : > { %v575_v33 = vshra.s32 %v573_v31, 16  ;;  %v574_v40 = vand.u32 65535, %v573_v31 }
 0x404   : > { %v568_v34 = vsel %vm566_vm11, %v565_v30, %v527_v32  ;;  %vm570_vm13 = vcmp.eq.s32.totalorder %v965_v20, %v565_v30 }
 0x405   : > { %v577_v35 = vcvt.s32.f32 %v575_v33  ;;  %v572_v36 = vsel %vm570_vm13, 2147483648, %v531_v1  ;;  %v576_v42 = vcvt.s32.f32 %v574_v40 }
 0x406   : > { %v588_v37 = vsel %vm473_vm1, %v572_v36, 2147483648 }
 0x407   : > { %578 = vmax.xlane.f32.xlu0 %v577_v35  ;;  %v590_v38 = vshra.s32 %v588_v37, 16  ;;  %v589_v43 = vand.u32 65535, %v588_v37 }
 0x409   : > { %v592_v39 = vcvt.s32.f32 %v590_v38  ;;  %v591_v46 = vcvt.s32.f32 %v589_v43 }
 0x40b   : > { %593 = vmax.xlane.f32.xlu1 %v592_v39 }
 0x490   : > { %v579_v41 = vpop.xlane.xlu0 %578 }
 0x491   : > { %vm580_vm14 = vcmp.eq.f32.partialorder %v577_v35, %v579_v41  ;;  %v585_v48 = vcvt.f32.s32 %v579_v41 }
 0x492   : > { %v581_v44 = vsel %vm580_vm14, %v576_v42, -inf }
 0x493   : > { %582 = vmax.xlane.f32.xlu0 %v581_v44  ;;  %v586_v50 = vshll.u32 %v585_v48, 16 }
 0x494   : > { %v594_v45 = vpop.xlane.xlu1 %593 }
 0x495   : > { %vm595_vm15 = vcmp.eq.f32.partialorder %v592_v39, %v594_v45  ;;  %v600_v51 = vcvt.f32.s32 %v594_v45 }
 0x496   : > { %v596_v47 = vsel %vm595_vm15, %v591_v46, -inf }
 0x497   : > { %597 = vmax.xlane.f32.xlu1 %v596_v47  ;;  %v601_v55 = vshll.u32 %v600_v51, 16 }
 0x51c   : > { %v583_v49 = vpop.xlane.xlu0 %582 }
 0x51d   : > { %v584_v52 = vcvt.f32.s32 %v583_v49 }
 0x51f   : > { %v587_v53 = vadd.s32 %v586_v50, %v584_v52 }
 0x520   : > { %v598_v54 = vpop.xlane.xlu1 %597 }
 0x521   : > { %v603_v56 = vand.u32 15, %v587_v53  ;;  %v599_v57 = vcvt.f32.s32 %v598_v54 }
 0x523   : > { %v605_v58 = vsub.s32 15, %v603_v56  ;;  %v602_v59 = vadd.s32 %v601_v55, %v599_v57 }
 0x525   : > { %v608_v60 = vsel %vm607_vm0, %v605_v58, %v567_v27  ;;  %v604_v61 = vand.u32 15, %v602_v59  ;;  %vm610_vm2 = vcmp.eq.s32.totalorder %v965_v20, %v605_v58 }
 0x526   : > { %v612_v62 = vsel %vm610_vm2, 2147483648, %v571_v29 }
 0x527   : > { %v606_v63 = vsub.s32 15, %v604_v61  ;;  %v614_v0 = vsel %vm473_vm1, %v612_v62, 2147483648 }
 0x528   : > { %v616_v1 = vshra.s32 %v614_v0, 16  ;;  %v615_v8 = vand.u32 65535, %v614_v0 }
 0x529   : > { %v609_v2 = vsel %vm607_vm0, %v606_v63, %v568_v34  ;;  %vm611_vm3 = vcmp.eq.s32.totalorder %v965_v20, %v606_v63 }
 0x52a   : > { %v618_v3 = vcvt.s32.f32 %v616_v1  ;;  %v613_v4 = vsel %vm611_vm3, 2147483648, %v572_v36  ;;  %v617_v10 = vcvt.s32.f32 %v615_v8 }
 0x52b   : > { %v629_v5 = vsel %vm473_vm1, %v613_v4, 2147483648  ;;  %vm648_vm1 = vcmp.eq.s32.totalorder %v965_v20, 3 }
 0x52c   : > { %619 = vmax.xlane.f32.xlu0 %v618_v3  ;;  %v631_v6 = vshra.s32 %v629_v5, 16  ;;  %v630_v11 = vand.u32 65535, %v629_v5 }
 0x52e   : > { %v633_v7 = vcvt.s32.f32 %v631_v6  ;;  %v632_v14 = vcvt.s32.f32 %v630_v11 }
 0x530   : > { %634 = vmax.xlane.f32.xlu1 %v633_v7 }
 0x5b5   : > { %v620_v9 = vpop.xlane.xlu0 %619 }
 0x5b6   : > { %vm621_vm4 = vcmp.eq.f32.partialorder %v618_v3, %v620_v9  ;;  %v626_v16 = vcvt.f32.s32 %v620_v9 }
 0x5b7   : > { %v622_v12 = vsel %vm621_vm4, %v617_v10, -inf }
 0x5b8   : > { %623 = vmax.xlane.f32.xlu0 %v622_v12  ;;  %v627_v18 = vshll.u32 %v626_v16, 16 }
 0x5b9   : > { %v635_v13 = vpop.xlane.xlu1 %634 }
 0x5ba   : > { %vm636_vm5 = vcmp.eq.f32.partialorder %v633_v7, %v635_v13  ;;  %v641_v19 = vcvt.f32.s32 %v635_v13 }
 0x5bb   : > { %v637_v15 = vsel %vm636_vm5, %v632_v14, -inf }
 0x5bc   : > { %638 = vmax.xlane.f32.xlu1 %v637_v15  ;;  %v642_v24 = vshll.u32 %v641_v19, 16 }
 0x641   : > { %v624_v17 = vpop.xlane.xlu0 %623 }
 0x642   : > { %v625_v21 = vcvt.f32.s32 %v624_v17 }
 0x644   : > { %v628_v22 = vadd.s32 %v627_v18, %v625_v21 }
 0x645   : > { %v639_v23 = vpop.xlane.xlu1 %638 }
 0x646   : > { %v644_v25 = vand.u32 15, %v628_v22  ;;  %v640_v26 = vcvt.f32.s32 %v639_v23 }
 0x648   : > { %v646_v27 = vsub.s32 15, %v644_v25  ;;  %v643_v28 = vadd.s32 %v642_v24, %v640_v26 }
 0x64a   : > { %v649_v29 = vsel %vm648_vm1, %v646_v27, %v608_v60  ;;  %v645_v30 = vand.u32 15, %v643_v28 }
 0x64b   : > { %652 = vst.msk [vmem:[%s282_s7] sm:$0xff] %vm651_vm6, %v649_v29 }
 0x64c   : > { %v647_v31 = vsub.s32 15, %v645_v30 }
 0x64e   : > { %v650_v32 = vsel %vm648_vm1, %v647_v31, %v609_v2 }
 0x64f   : > { %653 = vst.msk [vmem:[%s282_s7 + $0x8] sm:$0xff] %vm651_vm6, %v650_v32 }
 0x650 PF: > { %s18_s21 = sadd.s32 1, %s868_s21  }
 0x651   : > { %p15_p1 = scmp.ge.s32.totalorder %s18_s21, 4  }
 0x653   :  { %17 = sbr.rel (!%p15_p1) target bundleno = 1 (0x1), region = 87 }
 0x658   :  { %693 = vsyncpa [#allocation3], 1 }
 0x659   :  { %695 = vsyncpa [#allocation3 + $0x1], 1 }

// kernel: tpu_custom_call.1
= control target key start
LH: loop header
LB: loop body
LE: loop exit
PB: predicated region body
PF: predicated region fallthrough
CT: control target
= control target key end

     0   :  { %12 = vsyncpa [#allocation3], 0  ;;  %s908_s21 = smov 0   ;;  %s999_s0 = inlined_call_operand.vmem [shape: f32[32,32], index: 0, kind: input, shape index: {}]   ;;  %s1000_s1 = inlined_call_operand.hbm [shape: f32[32,32], index: 1, kind: input, shape index: {}]   ;;  %s1001_s2 = inlined_call_operand.vmem [shape: f32[1,32], index: 2, kind: input, shape index: {}]   ;;  %s1002_s3 = inlined_call_operand.vmem [shape: f32[32,16], index: 3, kind: input, shape index: {}]   ;;  %s1003_s4 = inlined_call_operand.vmem [shape: f32[1,16], index: 4, kind: input, shape index: {}]   ;;  %s1004_s5 = inlined_call_operand.vmem [shape: f32[32,16], index: 5, kind: output, shape index: {0}]   ;;  %s1005_s6 = inlined_call_operand.vmem [shape: s32[32,4], index: 6, kind: output, shape index: {1}]  }
   0x1 LB: > { %s756_s22 = sadd.s32 4294967295, %s868_s21   ;;  %p758_p0 = scmp.ge.s32.totalorder %s868_s21, 1  ;;  %s868_s21 = sphi %s908_s21, %s18_s21  }
   0x2   : > { %p185_p1 = scmp.lt.s32.totalorder %s868_s21, 3  ;;  %s870_s23 = smov [#allocation2]  }
   0x3   : > { %s197_s24 = sshll.u32 %s870_s23, 4  ;;  %p920_p3 = scmp.eq.s32.totalorder %s756_s22, 0  ;;  %s198_s24 = int_to_ptr.vmem [resolvable:$true] %s197_s24 }
   0x4   : > { %p916_p2 = pnand %p758_p0, %p185_p1  ;;  %s843_s27 = scalar_lea.vmem %s198_s24, 512 }
   0x5   : > { %p844_p7 = scmp.ne.s32.totalorder %s198_s24, %s843_s27  ;;  %p851_p10 = scmp.lt.s32.totalorder %s198_s24, %s198_s24 }
   0x6   : > { %p815_p4 = pneg %p916_p2  ;;  %p852_p11 = scmp.lt.s32.totalorder %s843_s27, %s843_s27 }
   0x8   : > { %p816_p5 = pnand %p920_p3, %p815_p4  ;;  %p853_p12 = por %p852_p11, %p851_p10 }
   0xa   : > { %p834_p6 = pneg %p816_p5 }
   0xc   : > { %p846_p8 = pnand %p844_p7, %p834_p6 }
   0xe   : > { %p847_p9 = pneg %p846_p8 }
  0x10   : > { %p854_p13 = pnand %p853_p12, %p847_p9 }
  0x12   : > { %857 = shalt.err (!%p854_p13)
}
  0x13   : > { %s871_s28 = smov 128   ;;  %s872_s29 = smov 8  }
  0x14   : > { %818 = dma.hbm_to_vmem [thread:$0]  (!%p816_p5), %s1000_s1, 512, %s198_s24, [#allocation3], %s871_s28, %s871_s28, %s872_s29  }
  0x15   : > { %231 = sbr.rel (%p916_p2) target bundleno = 1616 (0x650), region = 40 }
  0x1a   : > { %863 = dma.done.wait (%p920_p3), [#allocation3], 512  }
  0x1b   : > { %865 = vsyncadd (%p920_p3), [#allocation3], 4294966784  ;;  %s763_s8 = sshll.u32 %s756_s22, 1  ;;  %vm297_vm0 = vcmask 261120   ;;  %v289_v0 = vld [vmem:[#allocation2 + $0x18] sm:$0xff]  ;;  %v288_v1 = vld [vmem:[#allocation2 + $0x10] sm:$0xff]  ;;  %v476_v17 = vlaneseq }
  0x1c   : > { %p267_p0 = scmp.lt.s32.totalorder %s763_s8, 3  ;;  %789 = vmatprep.subr.mxu0 %v289_v0  ;;  %v287_v3 = vld [vmem:[#allocation2 + $0x8] sm:$0xff]  ;;  %v286_v4 = vld [vmem:[#allocation2] sm:$0xff]  ;;  %v384_v6 = vld [vmem:[%s1002_s3 + $0x18] sm:$0xff]  ;;  %vm473_vm1 = vcmask 130048  }
  0x1d   : > { %790 = vmatpush3.msra.mxu0 %v289_v0  ;;  %800 = vmatprep.subr.mxu1 %v384_v6  ;;  %v383_v7 = vld [vmem:[%s1002_s3 + $0x10] sm:$0xff]  ;;  %v382_v8 = vld [vmem:[%s1002_s3 + $0x8] sm:$0xff]  ;;  %v381_v9 = vld [vmem:[%s1002_s3] sm:$0xff]  ;;  %v965_v20 = vand.u32 127, %v476_v17 }
  0x1e   : > { %s1009_s8 = smov (!%p267_p0, %s763_s8), 3  ;;  %791 = vmatprep.subr.mxu0 %v288_v1  ;;  %801 = vmatpush3.msra.mxu1 %v384_v6  ;;  %v769_v10 = vld [vmem:[%s1001_s2] ss:$0 sm:$0xff] }
  0x1f   : > { %s937_s9 = sshll.u32 %s1009_s8, 3  ;;  %792 = vmatpush3.msra.mxu0 %v288_v1  ;;  %802 = vmatprep.subr.mxu1 %v383_v7  ;;  %v772_v18 = vld [vmem:[%s1003_s4] ss:$0 sm:$0xff]  ;;  %v488_v25 = vsub.s32 15, %v965_v20  ;;  %vm525_vm10 = vcmp.eq.s32.totalorder %v965_v20, 0  ;;  %vm566_vm11 = vcmp.eq.s32.totalorder %v965_v20, 1 }
  0x20   : > { %s270_s12 = scalar_lea.vmem %s999_s0, %s937_s9  ;;  %793 = vmatprep.subr.mxu0 %v287_v3  ;;  %803 = vmatpush3.msra.mxu1 %v383_v7  ;;  %s276_s28 = scalar_lea.vmem %s1004_s5, %s937_s9 }
  0x21   : > { %v284_v2 = vld [vmem:[%s270_s12] sm:$0xff]  ;;  %794 = vmatpush3.msra.mxu0 %v287_v3  ;;  %v285_v5 = vld [vmem:[%s270_s12 + $0x8] sm:$0xff]  ;;  %804 = vmatprep.subr.mxu1 %v382_v8  ;;  %s282_s7 = scalar_lea.vmem %s1005_s6, %s937_s9 }
  0x22   : > { %797 = vmatprep.mubr.msk.f32.mxu0 %vm297_vm0, %v284_v2  ;;  %795 = vmatprep.subr.mxu0 %v286_v4 }
  0x23   : > { %796 = vmatpush3.msra.mxu0 %v286_v4  ;;  %805 = vmatpush3.msra.mxu1 %v382_v8 }
  0x24   : > { %798 = vmatmul.mubr.msk.f32.vlgmr.msra.gmra.mxu0 %vm297_vm0, %v285_v5  ;;  %806 = vmatprep.subr.mxu1 %v381_v9 }
  0x25   : > { %807 = vmatpush3.msra.mxu1 %v381_v9 }
  0xe4   : > { %v799_v11 = vpop.f32.mrf.mxu0 }
  0xe5   : > { %v376_v12 = vadd.f32 %v799_v11, %v769_v10 }
  0xe6   : > { %v370_v13 = vpop.f32.mrf.mxu0 }
  0xe7   : > { %v371_v14 = vadd.f32 %v769_v10, %v370_v13  ;;  %v380_v16 = vmax.f32 %v376_v12, 0.0 }
  0xe9   : > { %v379_v15 = vmax.f32 %v371_v14, 0.0 }
  0xeb   : > { %808 = vmatprep.mubr.msk.f32.mxu1 %vm297_vm0, %v379_v15 }
  0xec   : > { %809 = vmatmul.mubr.msk.f32.vlgmr.msra.gmra.mxu1 %vm297_vm0, %v380_v16  ;;  %vm607_vm0 = vcmp.eq.s32.totalorder %v965_v20, 2 }
 0x1ac   : > { %v810_v19 = vpop.f32.mrf.mxu1 }
 0x1ad   : > { %v470_v21 = vadd.f32 %v810_v19, %v772_v18 }
 0x1ae   : > { %v464_v22 = vpop.f32.mrf.mxu1 }
 0x1af   : > { %vm481_vm2 = vcmp.lt.s32.totalorder %v470_v21, 0  ;;  %v483_v23 = vxor.u32 2147483647, %v470_v21  ;;  %v465_v24 = vadd.f32 %v772_v18, %v464_v22  ;;  %475 = vst.msk [vmem:[%s276_s28 + $0x8] sm:$0xff] %vm473_vm1, %v470_v21 }
 0x1b1   : > { %474 = vst.msk [vmem:[%s276_s28] sm:$0xff] %vm473_vm1, %v465_v24  ;;  %vm480_vm3 = vcmp.lt.s32.totalorder %v465_v24, 0  ;;  %v482_v26 = vxor.u32 2147483647, %v465_v24  ;;  %v485_v27 = vsel %vm481_vm2, %v483_v23, %v470_v21 }
 0x1b2   : > { %v487_v28 = vand.u32 4294967280, %v485_v27 }
 0x1b3   : > { %v484_v29 = vsel %vm480_vm3, %v482_v26, %v465_v24 }
 0x1b4   : > { %v486_v30 = vand.u32 4294967280, %v484_v29  ;;  %v490_v31 = vor.u32 %v488_v25, %v487_v28 }
 0x1b6   : > { %v489_v32 = vor.u32 %v488_v25, %v486_v30  ;;  %v506_v34 = vsel %vm473_vm1, %v490_v31, 2147483648 }
 0x1b7   : > { %v508_v37 = vshra.s32 %v506_v34, 16  ;;  %v507_v42 = vand.u32 65535, %v506_v34 }
 0x1b8   : > { %v491_v33 = vsel %vm473_vm1, %v489_v32, 2147483648 }
 0x1b9   : > { %v493_v35 = vshra.s32 %v491_v33, 16  ;;  %v510_v38 = vcvt.s32.f32 %v508_v37  ;;  %v492_v39 = vand.u32 65535, %v491_v33  ;;  %v509_v45 = vcvt.s32.f32 %v507_v42 }
 0x1bb   : > { %v495_v36 = vcvt.s32.f32 %v493_v35  ;;  %v494_v41 = vcvt.s32.f32 %v492_v39 }
 0x1bd   : > { %496 = vmax.xlane.f32.xlu0 %v495_v36 }
 0x1c1   : > { %511 = vmax.xlane.f32.xlu0 %v510_v38 }
 0x246   : > { %v497_v40 = vpop.xlane.xlu0 %496 }
 0x247   : > { %vm498_vm4 = vcmp.eq.f32.partialorder %v495_v36, %v497_v40  ;;  %v503_v47 = vcvt.f32.s32 %v497_v40 }
 0x248   : > { %v499_v43 = vsel %vm498_vm4, %v494_v41, -inf }
 0x249   : > { %500 = vmax.xlane.f32.xlu1 %v499_v43  ;;  %v504_v49 = vshll.u32 %v503_v47, 16 }
 0x24a   : > { %v512_v44 = vpop.xlane.xlu0 %511 }
 0x24b   : > { %vm513_vm5 = vcmp.eq.f32.partialorder %v510_v38, %v512_v44  ;;  %v518_v50 = vcvt.f32.s32 %v512_v44 }
 0x24c   : > { %v514_v46 = vsel %vm513_vm5, %v509_v45, -inf }
 0x24d   : > { %515 = vmax.xlane.f32.xlu1 %v514_v46  ;;  %v519_v54 = vshll.u32 %v518_v50, 16 }
 0x2d2   : > { %v501_v48 = vpop.xlane.xlu1 %500 }
 0x2d3   : > { %v502_v51 = vcvt.f32.s32 %v501_v48 }
 0x2d5   : > { %v505_v52 = vadd.s32 %v504_v49, %v502_v51 }
 0x2d6   : > { %v516_v53 = vpop.xlane.xlu1 %515 }
 0x2d7   : > { %v521_v55 = vand.u32 15, %v505_v52  ;;  %v517_v56 = vcvt.f32.s32 %v516_v53 }
 0x2d9   : > { %v523_v57 = vsub.s32 15, %v521_v55  ;;  %v520_v58 = vadd.s32 %v519_v54, %v517_v56 }
 0x2db   : > { %v522_v59 = vand.u32 15, %v520_v58  ;;  %vm528_vm6 = vcmp.eq.s32.totalorder %v965_v20, %v523_v57  ;;  %v526_v26 = vsel %vm525_vm10, %v523_v57, 0 }
 0x2dc   : > { %v530_v60 = vsel %vm528_vm6, 2147483648, %v489_v32  ;;  %vm651_vm6 = vcmask 31744  }
 0x2dd   : > { %v524_v61 = vsub.s32 15, %v522_v59  ;;  %v532_v62 = vsel %vm473_vm1, %v530_v60, 2147483648 }
 0x2de   : > { %v534_v63 = vshra.s32 %v532_v62, 16  ;;  %v533_v5 = vand.u32 65535, %v532_v62 }
 0x2df   : > { %vm529_vm7 = vcmp.eq.s32.totalorder %v965_v20, %v524_v61  ;;  %v527_v32 = vsel %vm525_vm10, %v524_v61, 0 }
 0x2e0   : > { %v536_v0 = vcvt.s32.f32 %v534_v63  ;;  %v531_v1 = vsel %vm529_vm7, 2147483648, %v490_v31  ;;  %v535_v7 = vcvt.s32.f32 %v533_v5 }
 0x2e1   : > { %v547_v2 = vsel %vm473_vm1, %v531_v1, 2147483648 }
 0x2e2   : > { %537 = vmax.xlane.f32.xlu0 %v536_v0  ;;  %v549_v3 = vshra.s32 %v547_v2, 16  ;;  %v548_v8 = vand.u32 65535, %v547_v2 }
 0x2e4   : > { %v551_v4 = vcvt.s32.f32 %v549_v3  ;;  %v550_v11 = vcvt.s32.f32 %v548_v8 }
 0x2e6   : > { %552 = vmax.xlane.f32.xlu1 %v551_v4 }
 0x36b   : > { %v538_v6 = vpop.xlane.xlu0 %537 }
 0x36c   : > { %vm539_vm8 = vcmp.eq.f32.partialorder %v536_v0, %v538_v6  ;;  %v544_v13 = vcvt.f32.s32 %v538_v6 }
 0x36d   : > { %v540_v9 = vsel %vm539_vm8, %v535_v7, -inf }
 0x36e   : > { %541 = vmax.xlane.f32.xlu0 %v540_v9  ;;  %v545_v15 = vshll.u32 %v544_v13, 16 }
 0x36f   : > { %v553_v10 = vpop.xlane.xlu1 %552 }
 0x370   : > { %vm554_vm9 = vcmp.eq.f32.partialorder %v551_v4, %v553_v10  ;;  %v559_v16 = vcvt.f32.s32 %v553_v10 }
 0x371   : > { %v555_v12 = vsel %vm554_vm9, %v550_v11, -inf }
 0x372   : > { %556 = vmax.xlane.f32.xlu1 %v555_v12  ;;  %v560_v21 = vshll.u32 %v559_v16, 16 }
 0x3f7   : > { %v542_v14 = vpop.xlane.xlu0 %541 }
 0x3f8   : > { %v543_v17 = vcvt.f32.s32 %v542_v14 }
 0x3fa   : > { %v546_v18 = vadd.s32 %v545_v15, %v543_v17 }
 0x3fb   : > { %v557_v19 = vpop.xlane.xlu1 %556 }
 0x3fc   : > { %v562_v22 = vand.u32 15, %v546_v18  ;;  %v558_v23 = vcvt.f32.s32 %v557_v19 }
 0x3fe   : > { %v564_v24 = vsub.s32 15, %v562_v22  ;;  %v561_v25 = vadd.s32 %v560_v21, %v558_v23 }
 0x400   : > { %v567_v27 = vsel %vm566_vm11, %v564_v24, %v526_v26  ;;  %v563_v28 = vand.u32 15, %v561_v25  ;;  %vm569_vm12 = vcmp.eq.s32.totalorder %v965_v20, %v564_v24 }
 0x401   : > { %v571_v29 = vsel %vm569_vm12, 2147483648, %v530_v60 }
 0x402   : > { %v565_v30 = vsub.s32 15, %v563_v28  ;;  %v573_v31 = vsel %vm473_vm1, %v571_v29, 2147483648 }
 0x403   : > { %v575_v33 = vshra.s32 %v573_v31, 16  ;;  %v574_v40 = vand.u32 65535, %v573_v31 }
 0x404   : > { %v568_v34 = vsel %vm566_vm11, %v565_v30, %v527_v32  ;;  %vm570_vm13 = vcmp.eq.s32.totalorder %v965_v20, %v565_v30 }
 0x405   : > { %v577_v35 = vcvt.s32.f32 %v575_v33  ;;  %v572_v36 = vsel %vm570_vm13, 2147483648, %v531_v1  ;;  %v576_v42 = vcvt.s32.f32 %v574_v40 }
 0x406   : > { %v588_v37 = vsel %vm473_vm1, %v572_v36, 2147483648 }
 0x407   : > { %578 = vmax.xlane.f32.xlu0 %v577_v35  ;;  %v590_v38 = vshra.s32 %v588_v37, 16  ;;  %v589_v43 = vand.u32 65535, %v588_v37 }
 0x409   : > { %v592_v39 = vcvt.s32.f32 %v590_v38  ;;  %v591_v46 = vcvt.s32.f32 %v589_v43 }
 0x40b   : > { %593 = vmax.xlane.f32.xlu1 %v592_v39 }
 0x490   : > { %v579_v41 = vpop.xlane.xlu0 %578 }
 0x491   : > { %vm580_vm14 = vcmp.eq.f32.partialorder %v577_v35, %v579_v41  ;;  %v585_v48 = vcvt.f32.s32 %v579_v41 }
 0x492   : > { %v581_v44 = vsel %vm580_vm14, %v576_v42, -inf }
 0x493   : > { %582 = vmax.xlane.f32.xlu0 %v581_v44  ;;  %v586_v50 = vshll.u32 %v585_v48, 16 }
 0x494   : > { %v594_v45 = vpop.xlane.xlu1 %593 }
 0x495   : > { %vm595_vm15 = vcmp.eq.f32.partialorder %v592_v39, %v594_v45  ;;  %v600_v51 = vcvt.f32.s32 %v594_v45 }
 0x496   : > { %v596_v47 = vsel %vm595_vm15, %v591_v46, -inf }
 0x497   : > { %597 = vmax.xlane.f32.xlu1 %v596_v47  ;;  %v601_v55 = vshll.u32 %v600_v51, 16 }
 0x51c   : > { %v583_v49 = vpop.xlane.xlu0 %582 }
 0x51d   : > { %v584_v52 = vcvt.f32.s32 %v583_v49 }
 0x51f   : > { %v587_v53 = vadd.s32 %v586_v50, %v584_v52 }
 0x520   : > { %v598_v54 = vpop.xlane.xlu1 %597 }
 0x521   : > { %v603_v56 = vand.u32 15, %v587_v53  ;;  %v599_v57 = vcvt.f32.s32 %v598_v54 }
 0x523   : > { %v605_v58 = vsub.s32 15, %v603_v56  ;;  %v602_v59 = vadd.s32 %v601_v55, %v599_v57 }
 0x525   : > { %v608_v60 = vsel %vm607_vm0, %v605_v58, %v567_v27  ;;  %v604_v61 = vand.u32 15, %v602_v59  ;;  %vm610_vm2 = vcmp.eq.s32.totalorder %v965_v20, %v605_v58 }
 0x526   : > { %v612_v62 = vsel %vm610_vm2, 2147483648, %v571_v29 }
 0x527   : > { %v606_v63 = vsub.s32 15, %v604_v61  ;;  %v614_v0 = vsel %vm473_vm1, %v612_v62, 2147483648 }
 0x528   : > { %v616_v1 = vshra.s32 %v614_v0, 16  ;;  %v615_v8 = vand.u32 65535, %v614_v0 }
 0x529   : > { %v609_v2 = vsel %vm607_vm0, %v606_v63, %v568_v34  ;;  %vm611_vm3 = vcmp.eq.s32.totalorder %v965_v20, %v606_v63 }
 0x52a   : > { %v618_v3 = vcvt.s32.f32 %v616_v1  ;;  %v613_v4 = vsel %vm611_vm3, 2147483648, %v572_v36  ;;  %v617_v10 = vcvt.s32.f32 %v615_v8 }
 0x52b   : > { %v629_v5 = vsel %vm473_vm1, %v613_v4, 2147483648  ;;  %vm648_vm1 = vcmp.eq.s32.totalorder %v965_v20, 3 }
 0x52c   : > { %619 = vmax.xlane.f32.xlu0 %v618_v3  ;;  %v631_v6 = vshra.s32 %v629_v5, 16  ;;  %v630_v11 = vand.u32 65535, %v629_v5 }
 0x52e   : > { %v633_v7 = vcvt.s32.f32 %v631_v6  ;;  %v632_v14 = vcvt.s32.f32 %v630_v11 }
 0x530   : > { %634 = vmax.xlane.f32.xlu1 %v633_v7 }
 0x5b5   : > { %v620_v9 = vpop.xlane.xlu0 %619 }
 0x5b6   : > { %vm621_vm4 = vcmp.eq.f32.partialorder %v618_v3, %v620_v9  ;;  %v626_v16 = vcvt.f32.s32 %v620_v9 }
 0x5b7   : > { %v622_v12 = vsel %vm621_vm4, %v617_v10, -inf }
 0x5b8   : > { %623 = vmax.xlane.f32.xlu0 %v622_v12  ;;  %v627_v18 = vshll.u32 %v626_v16, 16 }
 0x5b9   : > { %v635_v13 = vpop.xlane.xlu1 %634 }
 0x5ba   : > { %vm636_vm5 = vcmp.eq.f32.partialorder %v633_v7, %v635_v13  ;;  %v641_v19 = vcvt.f32.s32 %v635_v13 }
 0x5bb   : > { %v637_v15 = vsel %vm636_vm5, %v632_v14, -inf }
 0x5bc   : > { %638 = vmax.xlane.f32.xlu1 %v637_v15  ;;  %v642_v24 = vshll.u32 %v641_v19, 16 }
 0x641   : > { %v624_v17 = vpop.xlane.xlu0 %623 }
 0x642   : > { %v625_v21 = vcvt.f32.s32 %v624_v17 }
 0x644   : > { %v628_v22 = vadd.s32 %v627_v18, %v625_v21 }
 0x645   : > { %v639_v23 = vpop.xlane.xlu1 %638 }
 0x646   : > { %v644_v25 = vand.u32 15, %v628_v22  ;;  %v640_v26 = vcvt.f32.s32 %v639_v23 }
 0x648   : > { %v646_v27 = vsub.s32 15, %v644_v25  ;;  %v643_v28 = vadd.s32 %v642_v24, %v640_v26 }
 0x64a   : > { %v649_v29 = vsel %vm648_vm1, %v646_v27, %v608_v60  ;;  %v645_v30 = vand.u32 15, %v643_v28 }
 0x64b   : > { %652 = vst.msk [vmem:[%s282_s7] sm:$0xff] %vm651_vm6, %v649_v29 }
 0x64c   : > { %v647_v31 = vsub.s32 15, %v645_v30 }
 0x64e   : > { %v650_v32 = vsel %vm648_vm1, %v647_v31, %v609_v2 }
 0x64f   : > { %653 = vst.msk [vmem:[%s282_s7 + $0x8] sm:$0xff] %vm651_vm6, %v650_v32 }
 0x650 PF: > { %s18_s21 = sadd.s32 1, %s868_s21  }
 0x651   : > { %p15_p1 = scmp.ge.s32.totalorder %s18_s21, 4  }
 0x653   :  { %17 = sbr.rel (!%p15_p1) target bundleno = 1 (0x1), region = 87 }
 0x658   :  { %693 = vsyncpa [#allocation3], 1 }
 0x659   :  { %695 = vsyncpa [#allocation3 + $0x1], 1 }

</bundles_post_ra>
